<compile_context>
chip_gen: v7x
topology: tpu7x:2x2x1
jax: 0.10.0
libtpu: 0.0.40
codegen_flags: <defaults>
</compile_context>

<pallas_src>
import functools

import jax
import jax.numpy as jnp
from jax.experimental import pallas as pl
from jax.experimental.pallas import tpu as pltpu

_MIB = 1024 * 1024


def _round_up(x, m):
    return ((x + m - 1) // m) * m


def _largest_divisor_tile(padded, align, cap):
    """Largest multiple of `align` that divides `padded` and is <= cap."""
    cap = max(align, min(cap, padded))
    best = align
    t = align
    while t <= cap:
        if padded % t == 0:
            best = t
        t += align
    return best


def _vmem_plan():
    """Returns (vmem_limit_bytes, (cap_m, cap_k, cap_n), two_core_gen)."""
    try:
        vmem = pltpu.get_tpu_info().vmem_capacity_bytes
    except Exception:
        vmem = None
    if vmem is not None and vmem >= 100 * _MIB:
        # v5e / v6e: 128 MiB VMEM per TensorCore -> large tiles, ~28 MiB
        # double-buffered working set at the caps below.
        return 100 * _MIB, (512, 2048, 1024), False
    # v7x (64 MiB / TC) or unknown generation: stay under ~48 MiB so the
    # compiler keeps double buffering; mark as possibly 2-TC only if detected.
    return 48 * _MIB, (512, 1024, 512), vmem is not None


def _linear_bias_kernel(x_ref, w_ref, b_ref, o_ref):
    k = pl.program_id(2)

    @pl.when(k == 0)
    def _():
        o_ref[...] = jnp.zeros_like(o_ref)

    # o_ref is f32 and its index_map ignores k -> VMEM-resident accumulator.
    o_ref[...] += jnp.dot(x_ref[...], w_ref[...],
                          preferred_element_type=jnp.float32)

    @pl.when(k == pl.num_programs(2) - 1)
    def _():
        # Bias applied once, in the epilogue only.
        o_ref[...] += b_ref[...]


def _linear_nobias_kernel(x_ref, w_ref, o_ref):
    k = pl.program_id(2)

    @pl.when(k == 0)
    def _():
        o_ref[...] = jnp.zeros_like(o_ref)

    o_ref[...] += jnp.dot(x_ref[...], w_ref[...],
                          preferred_element_type=jnp.float32)


@functools.partial(jax.jit, static_argnames=("n_output",))
def basic_model_forward(x, weight_p, bias_p, n_output):
    """Forward pass of BasicModel (nn.Linear).

    Args:
      x:        (B, n_dim) float32.
      weight_p: (Dp, Op) float32 -- transposed + zero-padded once at init,
                Dp = round_up(n_dim, 128), Op = round_up(n_output, 128).
      bias_p:   (1, Op) float32 or None -- zero-padded once at init.
      n_output: true output width (static), used to slice the result.
    Returns:
      (B, n_output) float32.
    """
    B, D = x.shape
    Dp, Op = weight_p.shape  # already 128-multiples

    vmem_limit, (cap_m, cap_k, cap_n), two_core = _vmem_plan()

    Bp = _round_up(B, 8)
    tm = _largest_divisor_tile(Bp, 8, cap_m)
    tk = _largest_divisor_tile(Dp, 128, cap_k)
    tn = _largest_divisor_tile(Op, 128, cap_n)

    # On the 2-TensorCore generation make sure the parallel axes expose >=2
    # blocks so the grid can shard across both cores.
    if two_core and (Bp // tm) * (Op // tn) < 2:
        if Op >= 256:
            tn = _largest_divisor_tile(Op, 128, Op // 2)
        elif Bp >= 16:
            tm = _largest_divisor_tile(Bp, 8, Bp // 2)

    # Only the activations need per-call padding (zeros contribute 0 to the
    # accumulator); weight/bias were padded once at init.
    if (Bp, Dp) != (B, D):
        x = jnp.pad(x, ((0, Bp - B), (0, Dp - D)))

    grid = (Bp // tm, Op // tn, Dp // tk)

    compiler_params = pltpu.CompilerParams(
        dimension_semantics=("parallel", "parallel", "arbitrary"),
        vmem_limit_bytes=vmem_limit,
    )
    cost = pl.CostEstimate(
        flops=2 * Bp * Dp * Op,
        transcendentals=0,
        bytes_accessed=4 * (Bp * Dp + Dp * Op + Bp * Op),
    )
    out_shape = jax.ShapeDtypeStruct((Bp, Op), jnp.float32)

    if bias_p is not None:
        out = pl.pallas_call(
            _linear_bias_kernel,
            out_shape=out_shape,
            grid_spec=pltpu.PrefetchScalarGridSpec(
                num_scalar_prefetch=0,
                grid=grid,
                in_specs=[
                    pl.BlockSpec((tm, tk), lambda i, j, k: (i, k)),
                    pl.BlockSpec((tk, tn), lambda i, j, k: (k, j)),
                    pl.BlockSpec((1, tn), lambda i, j, k: (0, j)),
                ],
                out_specs=pl.BlockSpec((tm, tn), lambda i, j, k: (i, j)),
            ),
            compiler_params=compiler_params,
            cost_estimate=cost,
        )(x, weight_p, bias_p)
    else:
        out = pl.pallas_call(
            _linear_nobias_kernel,
            out_shape=out_shape,
            grid_spec=pltpu.PrefetchScalarGridSpec(
                num_scalar_prefetch=0,
                grid=grid,
                in_specs=[
                    pl.BlockSpec((tm, tk), lambda i, j, k: (i, k)),
                    pl.BlockSpec((tk, tn), lambda i, j, k: (k, j)),
                ],
                out_specs=pl.BlockSpec((tm, tn), lambda i, j, k: (i, j)),
            ),
            compiler_params=compiler_params,
            cost_estimate=cost,
        )(x, weight_p)

    return out[:B, :n_output]


def init_basic_model_params(n_dim, n_output, seed, include_bias=True):
    """nn.Linear-style init U(-1/sqrt(n_dim), 1/sqrt(n_dim)).

    The weight is relaid out + zero-padded ONCE here to (Dp, Op) =
    (round_up(n_dim,128), round_up(n_output,128)); the bias to (1, Op).
    The forward pass therefore never pays a per-call HBM pad/transpose.
    """
    key = jax.random.PRNGKey(seed)
    k_w, k_b = jax.random.split(key)
    bound = 1.0 / (n_dim ** 0.5)
    weight = jax.random.uniform(
        k_w, (n_output, n_dim), jnp.float32, minval=-bound, maxval=bound)

    Dp = _round_up(n_dim, 128)
    Op = _round_up(n_output, 128)
    weight_p = jnp.zeros((Dp, Op), jnp.float32)
    weight_p = weight_p.at[:n_dim, :n_output].set(weight.T)
    # TODO(synk): optionally store weight_p as bfloat16 (halves the dominant
    # HBM stream, native MXU path) if the owner accepts the numerics change.

    bias_p = None
    if include_bias:
        bias = jax.random.uniform(
            k_b, (n_output,), jnp.float32, minval=-bound, maxval=bound)
        bias_p = jnp.zeros((1, Op), jnp.float32).at[0, :n_output].set(bias)
    return weight_p, bias_p


if __name__ == "__main__":
    # Small shapes matching the module spec.
    n_dim, n_output, seed = 32, 8, 0
    batch = 4

    weight_p, bias_p = init_basic_model_params(n_dim, n_output, seed,
                                               include_bias=True)
    x = jax.random.normal(jax.random.PRNGKey(0), (batch, n_dim), jnp.float32)

    # With bias.
    out = jax.block_until_ready(basic_model_forward(x, weight_p, bias_p,
                                                    n_output))
    ref = x @ weight_p[:n_dim, :n_output] + bias_p[0, :n_output]
    assert out.shape == (batch, n_output)
    assert jnp.allclose(out, ref, atol=1e-5, rtol=1e-5)

    # Without bias.
    out_nb = jax.block_until_ready(basic_model_forward(x, weight_p, None,
                                                       n_output))
    assert jnp.allclose(out_nb, x @ weight_p[:n_dim, :n_output],
                        atol=1e-5, rtol=1e-5)

    # Larger non-power-of-two shape: exercises divisor-based tiling
    # (tk=640, tn=384 -> zero dead padding) and a multi-block grid.
    B2, D2, O2 = 512, 640, 384
    w2_p, b2_p = init_basic_model_params(D2, O2, seed=1, include_bias=True)
    x2 = jax.random.normal(jax.random.PRNGKey(2), (B2, D2), jnp.float32)
    out2 = jax.block_until_ready(basic_model_forward(x2, w2_p, b2_p, O2))
    ref2 = x2 @ w2_p[:D2, :O2] + b2_p[0, :O2]
    assert out2.shape == (B2, O2)
    assert jnp.allclose(out2, ref2, atol=1e-4, rtol=1e-4)

    print("KERNEL_OK")
</pallas_src>

<mosaic_0001>
module attributes {stable_mosaic.version = 11 : i64} {
  func.func @_linear_bias_kernel(%arg0: i32, %arg1: i32, %arg2: i32, %arg3: memref<8x128xf32, #tpu.memory_space<vmem>>, %arg4: memref<128x128xf32, #tpu.memory_space<vmem>>, %arg5: memref<1x128xf32, #tpu.memory_space<vmem>>, %arg6: memref<8x128xf32, #tpu.memory_space<vmem>>) attributes {dimension_semantics = [#tpu.dimension_semantics<parallel>, #tpu.dimension_semantics<parallel>, #tpu.dimension_semantics<arbitrary>], iteration_bounds = array<i64: 1, 1, 1>, scalar_prefetch = 0 : i64, scratch_operands = 0 : i64, tpu.core_type = #tpu.core_type<tc>, window_params = [{transform_indices = @transform_0, window_bounds = array<i64: 8, 128>}, {transform_indices = @transform_1, window_bounds = array<i64: 128, 128>}, {transform_indices = @transform_2, window_bounds = array<i64: 1, 128>}, {transform_indices = @transform_3, window_bounds = array<i64: 8, 128>}]} {
    %c0_i32 = arith.constant 0 : i32
    %0 = arith.cmpi eq, %arg2, %c0_i32 : i32
    %1 = arith.extui %0 : i1 to i32
    %c0_i32_0 = arith.constant 0 : i32
    %2 = arith.cmpi ne, %1, %c0_i32_0 : i32
    scf.if %2 {
      %cst_10 = arith.constant 0.000000e+00 : f32
      %12 = vector.broadcast %cst_10 : f32 to vector<8x128xf32>
      %c0_11 = arith.constant 0 : index
      %c0_12 = arith.constant 0 : index
      %13 = vector.load %arg6[%c0_11, %c0_12] : memref<8x128xf32, #tpu.memory_space<vmem>>, vector<8x128xf32>
      tpu.vector_store %arg6[%c0_11, %c0_12], %12 {strides = array<i32>} : memref<8x128xf32, #tpu.memory_space<vmem>>, vector<8x128xf32>,
    } else {
    }
    %c0 = arith.constant 0 : index
    %c0_1 = arith.constant 0 : index
    %3 = vector.load %arg6[%c0, %c0_1] : memref<8x128xf32, #tpu.memory_space<vmem>>, vector<8x128xf32>
    %c0_2 = arith.constant 0 : index
    %c0_3 = arith.constant 0 : index
    %4 = vector.load %arg3[%c0_2, %c0_3] : memref<8x128xf32, #tpu.memory_space<vmem>>, vector<8x128xf32>
    %c0_4 = arith.constant 0 : index
    %c0_5 = arith.constant 0 : index
    %5 = vector.load %arg4[%c0_4, %c0_5] : memref<128x128xf32, #tpu.memory_space<vmem>>, vector<128x128xf32>
    %cst = arith.constant dense<0.000000e+00> : vector<8x128xf32>
    %6 = tpu.matmul %4, %5, %cst {dimension_numbers = #tpu.dot_dimension_numbers<[1], [0], [0], [1], [0, 0, 1, 1], [], []>} : vector<8x128xf32>, vector<128x128xf32>, vector<8x128xf32> -> vector<8x128xf32>
    %7 = arith.addf %3, %6 : vector<8x128xf32>
    %c0_6 = arith.constant 0 : index
    %c0_7 = arith.constant 0 : index
    %8 = vector.load %arg6[%c0_6, %c0_7] : memref<8x128xf32, #tpu.memory_space<vmem>>, vector<8x128xf32>
    tpu.vector_store %arg6[%c0_6, %c0_7], %7 {strides = array<i32>} : memref<8x128xf32, #tpu.memory_space<vmem>>, vector<8x128xf32>,
    %c0_i32_8 = arith.constant 0 : i32
    %9 = arith.cmpi eq, %arg2, %c0_i32_8 : i32
    %10 = arith.extui %9 : i1 to i32
    %c0_i32_9 = arith.constant 0 : i32
    %11 = arith.cmpi ne, %10, %c0_i32_9 : i32
    scf.if %11 {
      %c0_10 = arith.constant 0 : index
      %c0_11 = arith.constant 0 : index
      %12 = vector.load %arg6[%c0_10, %c0_11] : memref<8x128xf32, #tpu.memory_space<vmem>>, vector<8x128xf32>
      %c0_12 = arith.constant 0 : index
      %c0_13 = arith.constant 0 : index
      %13 = vector.load %arg5[%c0_12, %c0_13] : memref<1x128xf32, #tpu.memory_space<vmem>>, vector<1x128xf32>
      %14 = vector.broadcast %13 : vector<1x128xf32> to vector<8x128xf32>
      %15 = arith.addf %12, %14 : vector<8x128xf32>
      %c0_14 = arith.constant 0 : index
      %c0_15 = arith.constant 0 : index
      %16 = vector.load %arg6[%c0_14, %c0_15] : memref<8x128xf32, #tpu.memory_space<vmem>>, vector<8x128xf32>
      tpu.vector_store %arg6[%c0_14, %c0_15], %15 {strides = array<i32>} : memref<8x128xf32, #tpu.memory_space<vmem>>, vector<8x128xf32>,
    } else {
    }
    return
  }
  func.func @transform_0(%arg0: i32, %arg1: i32, %arg2: i32) -> (i32, i32) {
    %c0_i32 = arith.constant 0 : i32
    return %arg0, %arg2 : i32, i32
  }
  func.func @transform_1(%arg0: i32, %arg1: i32, %arg2: i32) -> (i32, i32) {
    %c0_i32 = arith.constant 0 : i32
    return %arg2, %arg1 : i32, i32
  }
  func.func @transform_2(%arg0: i32, %arg1: i32, %arg2: i32) -> (i32, i32) {
    %c0_i32 = arith.constant 0 : i32
    %c0_i32_0 = arith.constant 0 : i32
    return %c0_i32, %arg1 : i32, i32
  }
  func.func @transform_3(%arg0: i32, %arg1: i32, %arg2: i32) -> (i32, i32) {
    %c0_i32 = arith.constant 0 : i32
    return %arg0, %arg1 : i32, i32
  }
}

</mosaic_0001>

<bundles_post_ra>
// kernel: basic_model_forward.1
= control target key start
LH: loop header
LB: loop body
LE: loop exit
PB: predicated region body
PF: predicated region fallthrough
CT: control target
= control target key end

     0   :  { %8 = vsyncpa [#allocation3], 0  ;;  %s248_s12 = smov [#allocation2]   ;;  %s295_s0 = inlined_call_operand.vmem [shape: f32[8,128], index: 0, kind: input, shape index: {}]   ;;  %s296_s1 = inlined_call_operand.hbm [shape: f32[128,128], index: 1, kind: input, shape index: {}]   ;;  %s297_s2 = inlined_call_operand.vmem [shape: f32[1,128], index: 2, kind: input, shape index: {}]   ;;  %s298_s3 = inlined_call_operand.vmem [shape: f32[8,128], index: 3, kind: output, shape index: {}]  }
   0x1   :  { %s16_s13 = sshll.u32 %s248_s12, 4  ;;  %s224_s16 = scalar_lea.hbm %s296_s1, 2048  ;;  %s17_s13 = int_to_ptr.vmem [resolvable:$true] %s16_s13 }
   0x2   :  { %p225_p0 = scmp.ne.s32.totalorder %s296_s1, %s224_s16  ;;  %p228_p1 = scmp.lt.u32.totalorder %s224_s16, %s296_s1 }
   0x4   :  { %p230_p2 = pnand %p228_p1, %p225_p0 }
   0x6   :  { %233 = shalt.err (!%p230_p2)
}
   0x7   :  { %s234_s21 = scalar_lea.vmem %s17_s13, 2048  ;;  %p239_p4 = scmp.lt.s32.totalorder %s17_s13, %s17_s13 }
   0x8   :  { %p235_p3 = scmp.ne.s32.totalorder %s17_s13, %s234_s21  ;;  %p240_p5 = scmp.lt.s32.totalorder %s234_s21, %s234_s21 }
   0xa   :  { %p241_p6 = por %p240_p5, %p239_p4 }
   0xc   :  { %p242_p7 = pnand %p241_p6, %p235_p3 }
   0xe   :  { %245 = shalt.err (!%p242_p7)
}
   0xf   :  { %s249_s22 = smov 128   ;;  %s250_s23 = smov 8  }
  0x10   :  { %22 = dma.hbm_to_vmem [thread:$0]  %s296_s1, 2048, %s17_s13, [#allocation3], %s249_s22, %s249_s22, %s250_s23  }
  0x11   :  { %246 = dma.done.wait [#allocation3], 2048  }
  0x12   :  { %247 = vsyncadd [#allocation3], 4294965248  ;;  %v251_v0 = vmov 0.0|0.0   ;;  %vm252_vm0 = vmmov 0   ;;  %v253_v1 = vmov 0.0   ;;  %v35_v2 = vld [vmem:[#allocation2] sm:$0xff] }
  0x13   :  { %194 = vmatprep.subr.bf16.mxu0 %v251_v0  ;;  %191 = vmatprep.mubr.msk.f32.mxu0 %vm252_vm0, %v253_v1  ;;  %v36_v3 = vld [vmem:[#allocation2 + $0x8] sm:$0xff]  ;;  %v37_v4 = vld [vmem:[#allocation2 + $0x10] sm:$0xff]  ;;  %v38_v6 = vld [vmem:[#allocation2 + $0x18] sm:$0xff] }
  0x14   :  { %v195_v5 = vpack.c.bf16 %v36_v3, %v35_v2  ;;  %v198_v7 = vpack.c.bf16 %v38_v6, %v37_v4  ;;  %v39_v8 = vld [vmem:[#allocation2 + $0x20] sm:$0xff]  ;;  %v40_v9 = vld [vmem:[#allocation2 + $0x28] sm:$0xff]  ;;  %v41_v11 = vld [vmem:[#allocation2 + $0x30] sm:$0xff] }
  0x15   :  { %v201_v10 = vpack.c.bf16 %v40_v9, %v39_v8  ;;  %v42_v12 = vld [vmem:[#allocation2 + $0x38] sm:$0xff]  ;;  %v43_v14 = vld [vmem:[#allocation2 + $0x40] sm:$0xff]  ;;  %v44_v15 = vld [vmem:[#allocation2 + $0x48] sm:$0xff] }
  0x16   :  { %196 = vmatpush3.bf16.msra.mxu0 %v195_v5  ;;  %v204_v13 = vpack.c.bf16 %v42_v12, %v41_v11  ;;  %v207_v16 = vpack.c.bf16 %v44_v15, %v43_v14  ;;  %v45_v17 = vld [vmem:[#allocation2 + $0x50] sm:$0xff]  ;;  %v46_v18 = vld [vmem:[#allocation2 + $0x58] sm:$0xff]  ;;  %v47_v20 = vld [vmem:[#allocation2 + $0x60] sm:$0xff] }
  0x17   :  { %197 = vmatprep.subr.bf16.mxu0 %v251_v0  ;;  %v210_v19 = vpack.c.bf16 %v46_v18, %v45_v17  ;;  %v48_v21 = vld [vmem:[#allocation2 + $0x68] sm:$0xff]  ;;  %v49_v23 = vld [vmem:[#allocation2 + $0x70] sm:$0xff]  ;;  %v50_v24 = vld [vmem:[#allocation2 + $0x78] sm:$0xff] }
  0x18   :  { %v213_v22 = vpack.c.bf16 %v48_v21, %v47_v20  ;;  %v216_v25 = vpack.c.bf16 %v50_v24, %v49_v23  ;;  %v34_v26 = vld [vmem:[%s295_s0] sm:$0xff] }
  0x19   :  { %v141_v28 = vld [vmem:[%s297_s2] ss:$0 sm:$0xff] }
  0x1a   :  { %199 = vmatpush3.bf16.msra.mxu0 %v198_v7 }
  0x1b   :  { %200 = vmatprep.subr.bf16.mxu0 %v251_v0 }
  0x1e   :  { %202 = vmatpush3.bf16.msra.mxu0 %v201_v10 }
  0x1f   :  { %203 = vmatprep.subr.bf16.mxu0 %v251_v0 }
  0x22   :  { %205 = vmatpush3.bf16.msra.mxu0 %v204_v13 }
  0x23   :  { %206 = vmatprep.subr.bf16.mxu0 %v251_v0 }
  0x26   :  { %208 = vmatpush3.bf16.msra.mxu0 %v207_v16 }
  0x27   :  { %209 = vmatprep.subr.bf16.mxu0 %v251_v0 }
  0x2a   :  { %211 = vmatpush3.bf16.msra.mxu0 %v210_v19 }
  0x2b   :  { %212 = vmatprep.subr.bf16.mxu0 %v251_v0 }
  0x2e   :  { %214 = vmatpush3.bf16.msra.mxu0 %v213_v22 }
  0x2f   :  { %215 = vmatprep.subr.bf16.mxu0 %v251_v0 }
  0x32   :  { %217 = vmatpush3.bf16.msra.mxu0 %v216_v25 }
  0x35   :  { %192 = vmatmul.mubr.f32.vlgmr.msra.gmra.mrb[0].mxu0 %v34_v26 }
 0x108   :  { %v117_v27 = vpop.f32.mrb[0].mxu0 }
 0x109   :  { %v193_v29 = vpop.f32.mrb[1].mxu0  ;;  %v134_v30 = vadd.f32 %v141_v28, %v117_v27 }
 0x10b   :  { %135 = vst [vmem:[%s298_s3] sm:$0xff] %v134_v30 }
 0x10c   :  { %140 = vsyncpa [#allocation3], 1 }

</bundles_post_ra>
